<compile_context>
chip_gen: v7x
topology: tpu7x:2x2x1
jax: 0.10.0
libtpu: 0.0.40
codegen_flags: <defaults>
</compile_context>

<pallas_src>
import functools

import jax
import jax.numpy as jnp
from jax.experimental import pallas as pl
from jax.experimental.pallas import tpu as pltpu


def _round_up(x, m):
    return ((x + m - 1) // m) * m


# -----------------------------------------------------------------------------
# Kernels.  Grid = (Bp//tm, Np//tn, Kp//tk), reduction axis (k) last.
# The output block index is constant along k, so o_ref stays VMEM-resident
# across the reduction and doubles as the f32 accumulator (no scratch).
# -----------------------------------------------------------------------------
def _linear_bias_kernel(x_ref, w_ref, b_ref, o_ref):
    k = pl.program_id(2)

    @pl.when(k == 0)
    def _():
        # Seed the f32 accumulator with the (f32) bias, broadcast over rows.
        o_ref[...] = jnp.broadcast_to(b_ref[...].astype(o_ref.dtype), o_ref.shape)

    o_ref[...] += jnp.dot(x_ref[...], w_ref[...], preferred_element_type=jnp.float32)


def _linear_nobias_kernel(x_ref, w_ref, o_ref):
    k = pl.program_id(2)

    @pl.when(k == 0)
    def _():
        o_ref[...] = jnp.zeros_like(o_ref)

    o_ref[...] += jnp.dot(x_ref[...], w_ref[...], preferred_element_type=jnp.float32)


@functools.partial(jax.jit, static_argnames=("n_out", "tn", "tk", "tm_max"))
def _linear_pallas(x, w_kn, b_row, *, n_out, tn, tk, tm_max=512):
    """x: (B, K) float; w_kn: (Kp, Np) pre-transposed/padded weight in compute
    dtype; b_row: (1, Np) f32 bias or None.  Returns (B, n_out) f32."""
    B, K = x.shape
    Kp, Np = w_kn.shape
    compute_dtype = w_kn.dtype
    c_item = jnp.dtype(compute_dtype).itemsize
    sub = 16 if c_item == 2 else 8  # dtype-aware sublane granularity

    # Small-batch policy: tm = Bp streams the whole weight exactly once.
    tm = min(tm_max, _round_up(B, sub))
    Bp = _round_up(B, tm)

    x_c = x.astype(compute_dtype)
    if Bp != B or Kp != K:
        x_c = jnp.pad(x_c, ((0, Bp - B), (0, Kp - K)))

    grid = (Bp // tm, Np // tn, Kp // tk)

    x_spec = pl.BlockSpec((tm, tk), lambda i, j, k: (i, k))
    w_spec = pl.BlockSpec((tk, tn), lambda i, j, k: (k, j))
    out_spec = pl.BlockSpec((tm, tn), lambda i, j, k: (i, j))

    flops = 2 * Bp * Np * Kp
    bytes_accessed = x_c.size * c_item + w_kn.size * c_item + Bp * Np * 4

    if b_row is not None:
        kernel = _linear_bias_kernel
        in_specs = [x_spec, w_spec, pl.BlockSpec((1, tn), lambda i, j, k: (0, j))]
        operands = (x_c, w_kn, b_row)
        bytes_accessed += b_row.size * 4
    else:
        kernel = _linear_nobias_kernel
        in_specs = [x_spec, w_spec]
        operands = (x_c, w_kn)

    # Double-buffered inputs + double-buffered f32 output tile (+ bias).
    vmem_needed = 2 * (tm * tk + tk * tn) * c_item + 2 * tm * tn * 4 + 2 * tn * 4
    # Cap well under v7x's 64 MiB/TC physical VMEM.
    vmem_limit = int(min(48 << 20, max(32 << 20, 2 * vmem_needed)))

    out = pl.pallas_call(
        kernel,
        out_shape=jax.ShapeDtypeStruct((Bp, Np), jnp.float32),
        grid_spec=pltpu.PrefetchScalarGridSpec(
            num_scalar_prefetch=0,
            grid=grid,
            in_specs=in_specs,
            out_specs=out_spec,
        ),
        compiler_params=pltpu.CompilerParams(
            dimension_semantics=("parallel", "parallel", "arbitrary"),
            vmem_limit_bytes=vmem_limit,
        ),
        cost_estimate=pl.CostEstimate(
            flops=flops, transcendentals=0, bytes_accessed=bytes_accessed
        ),
    )(*operands)

    return out[:B, :n_out]


class LinearPallas:
    """Pallas mirror of the custom PyTorch Linear (y = x @ W^T + b).

    Parameters are stored in f32, initialized uniform(-0.1, 0.1) like the
    original.  The weight is additionally kept pre-transposed to (K, N),
    padded to the tile grid and cast to the MXU compute dtype (bf16 by
    default) once at construction, so each forward is a single pallas_call
    over the weight (no per-call transpose/pad HBM passes).
    """

    # Default MXU tiles (multiples of 256 for full MXU utilization on every
    # generation; ~10-12 MiB double-buffered with bf16 inputs -> fits v7x).
    TM_MAX, TN_MAX, TK_MAX = 512, 1024, 1024

    def __init__(self, input_features, output_features, bias=True, key=None,
                 compute_dtype=jnp.bfloat16, xla_fast_path_elems=0):
        if key is None:
            key = jax.random.PRNGKey(0)
        kw, kb = jax.random.split(key)
        self.input_features = int(input_features)
        self.output_features = int(output_features)
        self.compute_dtype = compute_dtype
        self.xla_fast_path_elems = int(xla_fast_path_elems)

        self.weight = jax.random.uniform(
            kw, (output_features, input_features), jnp.float32,
            minval=-0.1, maxval=0.1)
        if bias:
            self.bias = jax.random.uniform(
                kb, (output_features,), jnp.float32, minval=-0.1, maxval=0.1)
        else:
            self.bias = None

        # ---- hoisted per-call work: transpose + pad + cast the weight once ----
        K, N = self.input_features, self.output_features
        self.tn = min(self.TN_MAX, _round_up(N, 128))
        self.tk = min(self.TK_MAX, _round_up(K, 128))
        Np, Kp = _round_up(N, self.tn), _round_up(K, self.tk)
        w_kn = jnp.pad(self.weight.T, ((0, Kp - K), (0, Np - N)))
        self.w_kn = w_kn.astype(compute_dtype)            # (Kp, Np), MXU dtype
        if self.bias is not None:
            self.b_row = jnp.pad(self.bias.reshape(1, N), ((0, 0), (0, Np - N)))  # f32
        else:
            self.b_row = None

    def __call__(self, x):
        B, K = x.shape
        assert K == self.input_features, "in_features mismatch"
        # Optional XLA fast path for very small problems where the pallas_call
        # fixed overhead dominates (disabled by default so the kernel runs).
        if B * K * self.output_features <= self.xla_fast_path_elems:
            y = jnp.dot(x.astype(self.compute_dtype),
                        self.w_kn[:K, :self.output_features],
                        preferred_element_type=jnp.float32)
            if self.b_row is not None:
                y = y + self.b_row[:, :self.output_features]
            return y
        return _linear_pallas(x, self.w_kn, self.b_row,
                              n_out=self.output_features,
                              tn=self.tn, tk=self.tk, tm_max=self.TM_MAX)


if __name__ == "__main__":
    key = jax.random.PRNGKey(0)
    k_x, k_params = jax.random.split(key)

    batch, in_features, out_features = 8, 32, 16
    x = jax.random.normal(k_x, (batch, in_features), dtype=jnp.float32)

    module = LinearPallas(in_features, out_features, bias=True, key=k_params)
    y = jax.block_until_ready(module(x))
    assert y.shape == (batch, out_features)
    assert y.dtype == jnp.float32

    # Reference computed the same way the kernel does (bf16 operands, f32 acc).
    xw_bf16 = jnp.dot(x.astype(jnp.bfloat16),
                      module.weight.T.astype(jnp.bfloat16),
                      preferred_element_type=jnp.float32)
    y_ref = xw_bf16 + module.bias[None, :]
    assert jnp.allclose(y, y_ref, atol=1e-3, rtol=1e-3), "mismatch vs bf16 reference"

    # Loose check against the pure-f32 reference (bf16 MXU feed per perf review).
    y_ref_f32 = x @ module.weight.T + module.bias[None, :]
    assert jnp.allclose(y, y_ref_f32, atol=3e-2, rtol=3e-2), "mismatch vs f32 reference"

    # Also exercise the no-bias path.
    module_nb = LinearPallas(in_features, out_features, bias=False, key=k_params)
    y_nb = jax.block_until_ready(module_nb(x))
    ref_nb = jnp.dot(x.astype(jnp.bfloat16),
                     module_nb.weight.T.astype(jnp.bfloat16),
                     preferred_element_type=jnp.float32)
    assert jnp.allclose(y_nb, ref_nb, atol=1e-3, rtol=1e-3), "no-bias path mismatch"

    print("KERNEL_OK")
</pallas_src>

<mosaic_0001>
module attributes {stable_mosaic.version = 11 : i64} {
  func.func @_linear_bias_kernel(%arg0: i32, %arg1: i32, %arg2: i32, %arg3: memref<16x128xbf16, #tpu.memory_space<vmem>>, %arg4: memref<128x128xbf16, #tpu.memory_space<vmem>>, %arg5: memref<1x128xf32, #tpu.memory_space<vmem>>, %arg6: memref<16x128xf32, #tpu.memory_space<vmem>>) attributes {dimension_semantics = [#tpu.dimension_semantics<parallel>, #tpu.dimension_semantics<parallel>, #tpu.dimension_semantics<arbitrary>], iteration_bounds = array<i64: 1, 1, 1>, scalar_prefetch = 0 : i64, scratch_operands = 0 : i64, tpu.core_type = #tpu.core_type<tc>, window_params = [{transform_indices = @transform_0, window_bounds = array<i64: 16, 128>}, {transform_indices = @transform_1, window_bounds = array<i64: 128, 128>}, {transform_indices = @transform_2, window_bounds = array<i64: 1, 128>}, {transform_indices = @transform_3, window_bounds = array<i64: 16, 128>}]} {
    %c0_i32 = arith.constant 0 : i32
    %0 = arith.cmpi eq, %arg2, %c0_i32 : i32
    %1 = arith.extui %0 : i1 to i32
    %c0_i32_0 = arith.constant 0 : i32
    %2 = arith.cmpi ne, %1, %c0_i32_0 : i32
    scf.if %2 {
      %c0_8 = arith.constant 0 : index
      %c0_9 = arith.constant 0 : index
      %9 = vector.load %arg5[%c0_8, %c0_9] : memref<1x128xf32, #tpu.memory_space<vmem>>, vector<1x128xf32>
      %10 = vector.shape_cast %9 : vector<1x128xf32> to vector<1x128xf32>
      %11 = vector.broadcast %10 : vector<1x128xf32> to vector<16x128xf32>
      %c0_10 = arith.constant 0 : index
      %c0_11 = arith.constant 0 : index
      %12 = vector.load %arg6[%c0_10, %c0_11] : memref<16x128xf32, #tpu.memory_space<vmem>>, vector<16x128xf32>
      tpu.vector_store %arg6[%c0_10, %c0_11], %11 {strides = array<i32>} : memref<16x128xf32, #tpu.memory_space<vmem>>, vector<16x128xf32>,
    } else {
    }
    %c0 = arith.constant 0 : index
    %c0_1 = arith.constant 0 : index
    %3 = vector.load %arg6[%c0, %c0_1] : memref<16x128xf32, #tpu.memory_space<vmem>>, vector<16x128xf32>
    %c0_2 = arith.constant 0 : index
    %c0_3 = arith.constant 0 : index
    %4 = vector.load %arg3[%c0_2, %c0_3] : memref<16x128xbf16, #tpu.memory_space<vmem>>, vector<16x128xbf16>
    %c0_4 = arith.constant 0 : index
    %c0_5 = arith.constant 0 : index
    %5 = vector.load %arg4[%c0_4, %c0_5] : memref<128x128xbf16, #tpu.memory_space<vmem>>, vector<128x128xbf16>
    %cst = arith.constant dense<0.000000e+00> : vector<16x128xf32>
    %6 = tpu.matmul %4, %5, %cst {dimension_numbers = #tpu.dot_dimension_numbers<[1], [0], [0], [1], [0, 0, 1, 1], [], []>} : vector<16x128xbf16>, vector<128x128xbf16>, vector<16x128xf32> -> vector<16x128xf32>
    %7 = arith.addf %3, %6 : vector<16x128xf32>
    %c0_6 = arith.constant 0 : index
    %c0_7 = arith.constant 0 : index
    %8 = vector.load %arg6[%c0_6, %c0_7] : memref<16x128xf32, #tpu.memory_space<vmem>>, vector<16x128xf32>
    tpu.vector_store %arg6[%c0_6, %c0_7], %7 {strides = array<i32>} : memref<16x128xf32, #tpu.memory_space<vmem>>, vector<16x128xf32>,
    return
  }
  func.func @transform_0(%arg0: i32, %arg1: i32, %arg2: i32) -> (i32, i32) {
    %c0_i32 = arith.constant 0 : i32
    return %arg0, %arg2 : i32, i32
  }
  func.func @transform_1(%arg0: i32, %arg1: i32, %arg2: i32) -> (i32, i32) {
    %c0_i32 = arith.constant 0 : i32
    return %arg2, %arg1 : i32, i32
  }
  func.func @transform_2(%arg0: i32, %arg1: i32, %arg2: i32) -> (i32, i32) {
    %c0_i32 = arith.constant 0 : i32
    %c0_i32_0 = arith.constant 0 : i32
    return %c0_i32, %arg1 : i32, i32
  }
  func.func @transform_3(%arg0: i32, %arg1: i32, %arg2: i32) -> (i32, i32) {
    %c0_i32 = arith.constant 0 : i32
    return %arg0, %arg1 : i32, i32
  }
}

</mosaic_0001>

<bundles_post_ra>
// kernel: _linear_pallas.1
= control target key start
LH: loop header
LB: loop body
LE: loop exit
PB: predicated region body
PF: predicated region fallthrough
CT: control target
= control target key end

     0   :  { %8 = vsyncpa [#allocation3], 0  ;;  %s243_s12 = smov [#allocation2]   ;;  %s292_s0 = inlined_call_operand.vmem [shape: bf16[16,128], index: 0, kind: input, shape index: {}]   ;;  %s293_s1 = inlined_call_operand.hbm [shape: bf16[128,128], index: 1, kind: input, shape index: {}]   ;;  %s294_s2 = inlined_call_operand.vmem [shape: f32[1,128], index: 2, kind: input, shape index: {}]   ;;  %s295_s3 = inlined_call_operand.vmem [shape: f32[16,128], index: 3, kind: output, shape index: {}]  }
   0x1   :  { %s16_s13 = sshll.u32 %s243_s12, 4  ;;  %s219_s16 = scalar_lea.hbm %s293_s1, 1024  ;;  %s17_s13 = int_to_ptr.vmem [resolvable:$true] %s16_s13 }
   0x2   :  { %p220_p0 = scmp.ne.s32.totalorder %s293_s1, %s219_s16  ;;  %p223_p1 = scmp.lt.u32.totalorder %s219_s16, %s293_s1 }
   0x4   :  { %p225_p2 = pnand %p223_p1, %p220_p0 }
   0x6   :  { %228 = shalt.err (!%p225_p2)
}
   0x7   :  { %s229_s21 = scalar_lea.vmem %s17_s13, 1024  ;;  %p234_p4 = scmp.lt.s32.totalorder %s17_s13, %s17_s13 }
   0x8   :  { %p230_p3 = scmp.ne.s32.totalorder %s17_s13, %s229_s21  ;;  %p235_p5 = scmp.lt.s32.totalorder %s229_s21, %s229_s21 }
   0xa   :  { %p236_p6 = por %p235_p5, %p234_p4 }
   0xc   :  { %p237_p7 = pnand %p236_p6, %p230_p3 }
   0xe   :  { %240 = shalt.err (!%p237_p7)
}
   0xf   :  { %s244_s22 = smov 64   ;;  %s245_s23 = smov 4  }
  0x10   :  { %22 = dma.hbm_to_vmem [thread:$0]  %s293_s1, 1024, %s17_s13, [#allocation3], %s244_s22, %s244_s22, %s245_s23  }
  0x11   :  { %241 = dma.done.wait [#allocation3], 1024  }
  0x12   :  { %242 = vsyncadd [#allocation3], 4294966272  ;;  %v246_v0 = vmov 0.0   ;;  %vm247_vm0 = vmmov 0   ;;  %v210_v1 = vld [vmem:[#allocation2] sm:$0xff]   ;;  %v211_v2 = vld [vmem:[#allocation2 + $0x8] sm:$0xff]  }
  0x13   :  { %185 = vmatprep.subr.bf16.mxu0 %v246_v0  ;;  %201 = vmatprep.mubr.msk.bf16.mxu0 %vm247_vm0, %v246_v0  ;;  %v212_v3 = vld [vmem:[#allocation2 + $0x10] sm:$0xff]   ;;  %v213_v4 = vld [vmem:[#allocation2 + $0x18] sm:$0xff]   ;;  %v214_v5 = vld [vmem:[#allocation2 + $0x20] sm:$0xff]  }
  0x14   :  { %186 = vmatpush3.bf16.msra.mxu0 %v210_v1  ;;  %v215_v6 = vld [vmem:[#allocation2 + $0x28] sm:$0xff]   ;;  %v216_v7 = vld [vmem:[#allocation2 + $0x30] sm:$0xff]   ;;  %v217_v8 = vld [vmem:[#allocation2 + $0x38] sm:$0xff]  }
  0x15   :  { %187 = vmatprep.subr.bf16.mxu0 %v246_v0  ;;  %v218_v9 = vld [vmem:[%s292_s0] sm:$0xff]  }
  0x16   :  { %v166_v10 = vld [vmem:[%s294_s2] ss:$0 sm:$0xff] }
  0x18   :  { %188 = vmatpush3.bf16.msra.mxu0 %v211_v2 }
  0x19   :  { %189 = vmatprep.subr.bf16.mxu0 %v246_v0 }
  0x1c   :  { %190 = vmatpush3.bf16.msra.mxu0 %v212_v3 }
  0x1d   :  { %191 = vmatprep.subr.bf16.mxu0 %v246_v0 }
  0x20   :  { %192 = vmatpush3.bf16.msra.mxu0 %v213_v4 }
  0x21   :  { %193 = vmatprep.subr.bf16.mxu0 %v246_v0 }
  0x24   :  { %194 = vmatpush3.bf16.msra.mxu0 %v214_v5 }
  0x25   :  { %195 = vmatprep.subr.bf16.mxu0 %v246_v0 }
  0x28   :  { %196 = vmatpush3.bf16.msra.mxu0 %v215_v6 }
  0x29   :  { %197 = vmatprep.subr.bf16.mxu0 %v246_v0 }
  0x2c   :  { %198 = vmatpush3.bf16.msra.mxu0 %v216_v7 }
  0x2d   :  { %199 = vmatprep.subr.bf16.mxu0 %v246_v0 }
  0x30   :  { %200 = vmatpush3.bf16.msra.mxu0 %v217_v8 }
  0x33   :  { %202 = vmatmul.mubr.bf16.vlgmr.msra.gmra.mrb[0].mxu0 %v218_v9 }
 0x106   :  { %v150_v11 = vpop.f32.mrb[0].mxu0 }
 0x107   :  { %v157_v12 = vadd.f32 %v166_v10, %v150_v11  ;;  %v203_v13 = vpop.f32.mrb[1].mxu0 }
 0x108   :  { %v153_v14 = vpop.f32.mrb[2].mxu0 }
 0x109   :  { %159 = vst [vmem:[%s295_s3] sm:$0xff] %v157_v12  ;;  %v158_v15 = vadd.f32 %v166_v10, %v153_v14  ;;  %v204_v16 = vpop.f32.mrb[3].mxu0 }
 0x10b   :  { %160 = vst [vmem:[%s295_s3 + $0x8] sm:$0xff] %v158_v15 }
 0x10c   :  { %165 = vsyncpa [#allocation3], 1 }

</bundles_post_ra>
